<compile_context>
chip_gen: v6e
topology: v6e:2x2x1
jax: 0.10.0
libtpu: 0.0.40
codegen_flags: <defaults>
</compile_context>

<pallas_src>
import functools

import jax
import jax.numpy as jnp
from jax.experimental import pallas as pl
from jax.experimental.pallas import tpu as pltpu


# ----------------------------------------------------------------------------
# Fused kernel: Bt batch elements per grid step.
#   inputs : w_ca (k,) SMEM, w_sa (2*k*k,) SMEM, W_pa (C,C) VMEM, b_pa (C,1) VMEM,
#            x (Bt,C,HW) VMEM
#   output : out (Bt,2C,HW) VMEM -- channels [0:C] = pixel branch, [C:2C] = spatial branch
# ----------------------------------------------------------------------------
def _attn_block_kernel(wca_ref, wsa_ref, wpa_ref, bpa_ref, x_ref, out_ref,
                       *, k_size, height, width):
    Bt, C, HW = x_ref.shape
    H, W = height, width
    pad = (k_size - 1) // 2
    kk = k_size * k_size

    # --- ECA channel attention (per-image; tiny (C,1) work) -------------------
    ca = []                                            # list of (C, HW); stays on-chip only
    for b in range(Bt):
        x_b = x_ref[b]                                 # (C, HW)
        avg = jnp.mean(x_b, axis=1, keepdims=True)     # (C, 1) global average pool
        if pad > 0:
            zp = jnp.zeros((pad, 1), jnp.float32)
            avg = jnp.concatenate([zp, avg, zp], axis=0)
        y = wca_ref[0] * avg[0:C, :]
        for j in range(1, k_size):                     # 1D conv over channels (scalars in SMEM)
            y = y + wca_ref[j] * avg[j:j + C, :]
        ca.append(x_b * jax.nn.sigmoid(y))             # (C, HW)

    # --- CBAM spatial attention: batch-packed (Bt, HW) maps -------------------
    mean_rows = [jnp.mean(cb, axis=0, keepdims=True) for cb in ca]   # each (1, HW)
    max_rows = [jnp.max(cb, axis=0, keepdims=True) for cb in ca]
    mean_map = mean_rows[0] if Bt == 1 else jnp.concatenate(mean_rows, axis=0)  # (Bt, HW)
    max_map = max_rows[0] if Bt == 1 else jnp.concatenate(max_rows, axis=0)     # (Bt, HW)

    # hoisted one-sided edge masks (center entries are statically all-true -> None)
    idx = jax.lax.broadcasted_iota(jnp.int32, (Bt, HW), 1)   # flat spatial index per row
    col = idx % W                                            # column index
    row_masks, col_masks = [], []
    for d in range(k_size):
        dh = d - pad
        if dh < 0:
            row_masks.append(idx >= (-dh) * W)        # needs h + dh >= 0
        elif dh > 0:
            row_masks.append(idx < (H - dh) * W)      # needs h + dh < H
        else:
            row_masks.append(None)
        dw = d - pad
        if dw < 0:
            col_masks.append(col >= -dw)              # needs w + dw >= 0
        elif dw > 0:
            col_masks.append(col < (W - dw))          # needs w + dw < W
        else:
            col_masks.append(None)

    acc = None                                         # init with first tap (no zeros+add)
    for di in range(k_size):
        for dj in range(k_size):
            dh, dw = di - pad, dj - pad
            tap = di * k_size + dj
            # the shift is linear -> fuse the two input maps before the (shared) roll
            pre = wsa_ref[tap] * mean_map + wsa_ref[kk + tap] * max_map
            s = dh * W + dw
            shifted = pltpu.roll(pre, (-s) % HW, 1) if s != 0 else pre
            rm, cm = row_masks[di], col_masks[dj]
            if rm is not None and cm is not None:
                m = rm & cm
            else:
                m = rm if rm is not None else cm
            term = shifted if m is None else jnp.where(m, shifted, 0.0)
            acc = term if acc is None else acc + term
    gate_s = jax.nn.sigmoid(acc)                       # (Bt, HW), EUP on packed sublanes

    # --- pixel attention + residuals + stores (per image; pa/sa short-lived) --
    for b in range(Bt):
        x_b = x_ref[b]
        ca_b = ca[b]
        if C >= 8:
            # MXU path: the MXU slot is otherwise completely idle in this kernel.
            pa_pre = jnp.dot(wpa_ref[...], ca_b,
                             preferred_element_type=jnp.float32) + bpa_ref[...]
        else:
            # tiny C: VPU broadcast-MAC; bias folded into the first term.
            pa_pre = bpa_ref[...] + wpa_ref[:, 0:1] * ca_b[0:1, :]
            for c in range(1, C):
                pa_pre = pa_pre + wpa_ref[:, c:c + 1] * ca_b[c:c + 1, :]
        pa_b = ca_b * jax.nn.sigmoid(pa_pre) + x_b                 # pixel branch + residual
        sa_b = ca_b * gate_s[b:b + 1, :] + x_b                     # spatial branch + residual
        if C % 8 == 0:
            out_ref[b, 0:C, :] = pa_b
            out_ref[b, C:2 * C, :] = sa_b
        else:
            # C not a multiple of 8: one dense (2C, HW) store instead of 2 masked sub-stores
            out_ref[b] = jnp.concatenate([pa_b, sa_b], axis=0)


# ----------------------------------------------------------------------------
# Wrapper
# ----------------------------------------------------------------------------
def _pick_batch_tile(B, max_bt=8):
    # Largest divisor of B that is <= max_bt: packs the batch into the sublane
    # dimension of the spatial-attention maps (up to 8x VPU/XLU occupancy).
    # TODO(synk): on v7x prefer a tile that still leaves >= 2 grid steps so both
    #             TensorCores receive work when B is small.
    for bt in range(min(max_bt, B), 0, -1):
        if B % bt == 0:
            return bt
    return 1


def attn_block(x, w_ca, W_pa, b_pa, w_sa, *, k_size, batch_tile=None):
    B, C, H, W = x.shape
    HW = H * W
    pad = (k_size - 1) // 2
    assert H > pad and W > pad, "image must be larger than the conv halo"

    Bt = _pick_batch_tile(B) if batch_tile is None else batch_tile
    assert B % Bt == 0, "batch tile must divide the batch"

    x_flat = x.reshape(B, C, HW)                       # free (minor-dims collapse)

    # explicit VMEM budget: double-buffered in+out blocks + resident weights + headroom
    block_bytes = (Bt * C * HW + Bt * 2 * C * HW) * 4
    weight_bytes = (C * C + C) * 4
    vmem_limit = min(4 * block_bytes + weight_bytes + (16 << 20), 64 << 20)

    out_flat = pl.pallas_call(
        functools.partial(_attn_block_kernel, k_size=k_size, height=H, width=W),
        out_shape=jax.ShapeDtypeStruct((B, 2 * C, HW), jnp.float32),
        grid=(B // Bt,),
        in_specs=[
            pl.BlockSpec(memory_space=pltpu.MemorySpace.SMEM),      # w_ca (k,)
            pl.BlockSpec(memory_space=pltpu.MemorySpace.SMEM),      # w_sa (2*k*k,)
            pl.BlockSpec((C, C), lambda g: (0, 0)),                 # W_pa (resident)
            pl.BlockSpec((C, 1), lambda g: (0, 0)),                 # b_pa (resident)
            pl.BlockSpec((Bt, C, HW), lambda g: (g, 0, 0)),         # x
        ],
        out_specs=pl.BlockSpec((Bt, 2 * C, HW), lambda g: (g, 0, 0)),
        compiler_params=pltpu.CompilerParams(
            dimension_semantics=("parallel",),                      # batch tiles independent
            vmem_limit_bytes=vmem_limit,
        ),
    )(w_ca, w_sa, W_pa, b_pa, x_flat)

    # torch.cat((pixel_out, spatial_out), dim=1) already done in-kernel; reshape is free
    return out_flat.reshape(B, 2 * C, H, W)


# ----------------------------------------------------------------------------
# Pure-JAX reference (for verification)
# ----------------------------------------------------------------------------
def attn_block_ref(x, w_ca, W_pa, b_pa, w_sa, *, k_size):
    B, C, H, W = x.shape
    pad = (k_size - 1) // 2
    avg = x.mean(axis=(2, 3))                               # (B, C)
    avg_p = jnp.pad(avg, ((0, 0), (pad, pad)))
    y = sum(w_ca[j] * avg_p[:, j:j + C] for j in range(k_size))
    gate_c = jax.nn.sigmoid(y)[:, :, None, None]
    ca = x * gate_c
    pa_pre = jnp.einsum('oc,bchw->bohw', W_pa, ca) + b_pa.reshape(1, C, 1, 1)
    pa_out = ca * jax.nn.sigmoid(pa_pre) + x
    maps = jnp.stack([ca.mean(axis=1), ca.max(axis=1)], axis=1)       # (B, 2, H, W)
    maps_p = jnp.pad(maps, ((0, 0), (0, 0), (pad, pad), (pad, pad)))
    acc = jnp.zeros((B, H, W), jnp.float32)
    for ci in range(2):
        for di in range(k_size):
            for dj in range(k_size):
                acc = acc + w_sa[ci * k_size * k_size + di * k_size + dj] \
                    * maps_p[:, ci, di:di + H, dj:dj + W]
    sa_out = ca * jax.nn.sigmoid(acc)[:, None] + x
    return jnp.concatenate([pa_out, sa_out], axis=1)


if __name__ == "__main__":
    B, C, H, W = 2, 4, 16, 16
    k_size = 3

    key = jax.random.PRNGKey(0)
    kx, k1, k2, k3, k4 = jax.random.split(key, 5)
    x = jax.random.normal(kx, (B, C, H, W), jnp.float32)

    # deterministic parameter init (synthetic weights, shapes per module __init__)
    w_ca = jax.random.normal(k1, (k_size,), jnp.float32) * 0.5          # ECA Conv1d(1,1,k), no bias
    W_pa = jax.random.normal(k2, (C, C), jnp.float32) * 0.3             # PA Conv2d(C,C,1) weight
    b_pa = jax.random.normal(k3, (C, 1), jnp.float32) * 0.1             # PA Conv2d bias
    w_sa = jax.random.normal(k4, (2 * k_size * k_size,), jnp.float32) * 0.2  # SA Conv2d(2,1,k), no bias

    out = attn_block(x, w_ca, W_pa, b_pa, w_sa, k_size=k_size)
    out = jax.block_until_ready(out)

    ref = attn_block_ref(x, w_ca, W_pa, b_pa, w_sa, k_size=k_size)
    assert out.shape == (B, 2 * C, H, W), out.shape
    assert jnp.allclose(out, ref, atol=1e-4, rtol=1e-4), float(jnp.max(jnp.abs(out - ref)))

    print("KERNEL_OK")
</pallas_src>

<mosaic_0001>
module attributes {stable_mosaic.version = 11 : i64} {
  func.func @_attn_block_kernel(%arg0: i32, %arg1: memref<3xf32, #tpu.memory_space<smem>>, %arg2: memref<18xf32, #tpu.memory_space<smem>>, %arg3: memref<4x4xf32, #tpu.memory_space<vmem>>, %arg4: memref<4x1xf32, #tpu.memory_space<vmem>>, %arg5: memref<2x4x256xf32, #tpu.memory_space<vmem>>, %arg6: memref<2x8x256xf32, #tpu.memory_space<vmem>>) attributes {dimension_semantics = [#tpu.dimension_semantics<parallel>], iteration_bounds = array<i64: 1>, scalar_prefetch = 0 : i64, scratch_operands = 0 : i64, tpu.core_type = #tpu.core_type<tc>, window_params = [{transform_indices = @transform_0, window_bounds = array<i64: 3>}, {transform_indices = @transform_1, window_bounds = array<i64: 18>}, {pipeline_mode = #tpu.pipeline_mode<synchronous>, transform_indices = @transform_2, window_bounds = array<i64: 4, 4>}, {pipeline_mode = #tpu.pipeline_mode<synchronous>, transform_indices = @transform_3, window_bounds = array<i64: 4, 1>}, {transform_indices = @transform_4, window_bounds = array<i64: 2, 4, 256>}, {transform_indices = @transform_5, window_bounds = array<i64: 2, 8, 256>}]} {
    %c0 = arith.constant 0 : index
    %c0_0 = arith.constant 0 : index
    %c0_1 = arith.constant 0 : index
    %0 = vector.load %arg5[%c0, %c0_0, %c0_1] : memref<2x4x256xf32, #tpu.memory_space<vmem>>, vector<1x4x256xf32>
    %1 = vector.shape_cast %0 : vector<1x4x256xf32> to vector<4x256xf32>
    %cst = arith.constant dense<0.000000e+00> : vector<4xf32>
    %2 = vector.multi_reduction <add>, %1, %cst [1] : vector<4x256xf32> to vector<4xf32>
    %3 = vector.shape_cast %2 : vector<4xf32> to vector<4x1xf32>
    %cst_2 = arith.constant 2.560000e+02 : f32
    %4 = vector.broadcast %cst_2 : f32 to vector<4x1xf32>
    %5 = arith.divf %3, %4 : vector<4x1xf32>
    %cst_3 = arith.constant 0.000000e+00 : f32
    %6 = vector.broadcast %cst_3 : f32 to vector<1x1xf32>
    %7 = tpu.concatenate %6, %5, %6 in 0 : vector<1x1xf32>, vector<4x1xf32>, vector<1x1xf32> -> vector<6x1xf32>
    %c0_4 = arith.constant 0 : index
    %8 = memref.load %arg1[%c0_4] : memref<3xf32, #tpu.memory_space<smem>>
    %9 = vector.extract_strided_slice %7 {offsets = [0, 0], sizes = [4, 1], strides = [1, 1]} : vector<6x1xf32> to vector<4x1xf32>
    %10 = vector.broadcast %8 : f32 to vector<4x1xf32>
    %11 = arith.mulf %10, %9 : vector<4x1xf32>
    %c1 = arith.constant 1 : index
    %12 = memref.load %arg1[%c1] : memref<3xf32, #tpu.memory_space<smem>>
    %13 = vector.extract_strided_slice %7 {offsets = [1, 0], sizes = [4, 1], strides = [1, 1]} : vector<6x1xf32> to vector<4x1xf32>
    %14 = vector.broadcast %12 : f32 to vector<4x1xf32>
    %15 = arith.mulf %14, %13 : vector<4x1xf32>
    %16 = arith.addf %11, %15 : vector<4x1xf32>
    %c2 = arith.constant 2 : index
    %17 = memref.load %arg1[%c2] : memref<3xf32, #tpu.memory_space<smem>>
    %18 = vector.extract_strided_slice %7 {offsets = [2, 0], sizes = [4, 1], strides = [1, 1]} : vector<6x1xf32> to vector<4x1xf32>
    %19 = vector.broadcast %17 : f32 to vector<4x1xf32>
    %20 = arith.mulf %19, %18 : vector<4x1xf32>
    %21 = arith.addf %16, %20 : vector<4x1xf32>
    %22 = arith.negf %21 : vector<4x1xf32>
    %23 = math.exp %22 : vector<4x1xf32>
    %cst_5 = arith.constant 1.000000e+00 : f32
    %24 = vector.broadcast %cst_5 : f32 to vector<4x1xf32>
    %25 = arith.addf %24, %23 : vector<4x1xf32>
    %26 = arith.divf %24, %25 : vector<4x1xf32>
    %27 = vector.broadcast %26 : vector<4x1xf32> to vector<4x256xf32>
    %28 = arith.mulf %1, %27 : vector<4x256xf32>
    %c1_6 = arith.constant 1 : index
    %c0_7 = arith.constant 0 : index
    %c0_8 = arith.constant 0 : index
    %29 = vector.load %arg5[%c1_6, %c0_7, %c0_8] : memref<2x4x256xf32, #tpu.memory_space<vmem>>, vector<1x4x256xf32>
    %30 = vector.shape_cast %29 : vector<1x4x256xf32> to vector<4x256xf32>
    %cst_9 = arith.constant dense<0.000000e+00> : vector<4xf32>
    %31 = vector.multi_reduction <add>, %30, %cst_9 [1] : vector<4x256xf32> to vector<4xf32>
    %32 = vector.shape_cast %31 : vector<4xf32> to vector<4x1xf32>
    %cst_10 = arith.constant 2.560000e+02 : f32
    %33 = vector.broadcast %cst_10 : f32 to vector<4x1xf32>
    %34 = arith.divf %32, %33 : vector<4x1xf32>
    %cst_11 = arith.constant 0.000000e+00 : f32
    %35 = vector.broadcast %cst_11 : f32 to vector<1x1xf32>
    %36 = tpu.concatenate %35, %34, %35 in 0 : vector<1x1xf32>, vector<4x1xf32>, vector<1x1xf32> -> vector<6x1xf32>
    %c0_12 = arith.constant 0 : index
    %37 = memref.load %arg1[%c0_12] : memref<3xf32, #tpu.memory_space<smem>>
    %38 = vector.extract_strided_slice %36 {offsets = [0, 0], sizes = [4, 1], strides = [1, 1]} : vector<6x1xf32> to vector<4x1xf32>
    %39 = vector.broadcast %37 : f32 to vector<4x1xf32>
    %40 = arith.mulf %39, %38 : vector<4x1xf32>
    %c1_13 = arith.constant 1 : index
    %41 = memref.load %arg1[%c1_13] : memref<3xf32, #tpu.memory_space<smem>>
    %42 = vector.extract_strided_slice %36 {offsets = [1, 0], sizes = [4, 1], strides = [1, 1]} : vector<6x1xf32> to vector<4x1xf32>
    %43 = vector.broadcast %41 : f32 to vector<4x1xf32>
    %44 = arith.mulf %43, %42 : vector<4x1xf32>
    %45 = arith.addf %40, %44 : vector<4x1xf32>
    %c2_14 = arith.constant 2 : index
    %46 = memref.load %arg1[%c2_14] : memref<3xf32, #tpu.memory_space<smem>>
    %47 = vector.extract_strided_slice %36 {offsets = [2, 0], sizes = [4, 1], strides = [1, 1]} : vector<6x1xf32> to vector<4x1xf32>
    %48 = vector.broadcast %46 : f32 to vector<4x1xf32>
    %49 = arith.mulf %48, %47 : vector<4x1xf32>
    %50 = arith.addf %45, %49 : vector<4x1xf32>
    %51 = arith.negf %50 : vector<4x1xf32>
    %52 = math.exp %51 : vector<4x1xf32>
    %cst_15 = arith.constant 1.000000e+00 : f32
    %53 = vector.broadcast %cst_15 : f32 to vector<4x1xf32>
    %54 = arith.addf %53, %52 : vector<4x1xf32>
    %55 = arith.divf %53, %54 : vector<4x1xf32>
    %56 = vector.broadcast %55 : vector<4x1xf32> to vector<4x256xf32>
    %57 = arith.mulf %30, %56 : vector<4x256xf32>
    %cst_16 = arith.constant dense<0.000000e+00> : vector<256xf32>
    %58 = vector.multi_reduction <add>, %28, %cst_16 [0] : vector<4x256xf32> to vector<256xf32>
    %59 = vector.shape_cast %58 : vector<256xf32> to vector<1x256xf32>
    %cst_17 = arith.constant 4.000000e+00 : f32
    %60 = vector.broadcast %cst_17 : f32 to vector<1x256xf32>
    %61 = arith.divf %59, %60 : vector<1x256xf32>
    %cst_18 = arith.constant dense<0.000000e+00> : vector<256xf32>
    %62 = vector.multi_reduction <add>, %57, %cst_18 [0] : vector<4x256xf32> to vector<256xf32>
    %63 = vector.shape_cast %62 : vector<256xf32> to vector<1x256xf32>
    %cst_19 = arith.constant 4.000000e+00 : f32
    %64 = vector.broadcast %cst_19 : f32 to vector<1x256xf32>
    %65 = arith.divf %63, %64 : vector<1x256xf32>
    %cst_20 = arith.constant dense<0xFF800000> : vector<256xf32>
    %66 = vector.multi_reduction <maximumf>, %28, %cst_20 [0] : vector<4x256xf32> to vector<256xf32>
    %67 = vector.shape_cast %66 : vector<256xf32> to vector<1x256xf32>
    %cst_21 = arith.constant dense<0xFF800000> : vector<256xf32>
    %68 = vector.multi_reduction <maximumf>, %57, %cst_21 [0] : vector<4x256xf32> to vector<256xf32>
    %69 = vector.shape_cast %68 : vector<256xf32> to vector<1x256xf32>
    %70 = tpu.concatenate %61, %65 in 0 : vector<1x256xf32>, vector<1x256xf32> -> vector<2x256xf32>
    %71 = tpu.concatenate %67, %69 in 0 : vector<1x256xf32>, vector<1x256xf32> -> vector<2x256xf32>
    %72 = tpu.iota {dimensions = array<i32: 1>} : vector<2x256xi32>
    %c16_i32 = arith.constant 16 : i32
    %c0_i32 = arith.constant 0 : i32
    %73 = arith.cmpi eq, %c16_i32, %c0_i32 : i32
    %c1_i32 = arith.constant 1 : i32
    %74 = arith.select %73, %c1_i32, %c16_i32 : i32
    %75 = vector.broadcast %74 : i32 to vector<2x256xi32>
    %76 = arith.remsi %72, %75 : vector<2x256xi32>
    %c0_i32_22 = arith.constant 0 : i32
    %77 = vector.broadcast %c0_i32_22 : i32 to vector<2x256xi32>
    %78 = arith.cmpi ne, %76, %77 : vector<2x256xi32>
    %c0_i32_23 = arith.constant 0 : i32
    %79 = vector.broadcast %c0_i32_23 : i32 to vector<2x256xi32>
    %80 = arith.cmpi slt, %76, %79 : vector<2x256xi32>
    %c0_i32_24 = arith.constant 0 : i32
    %81 = arith.cmpi slt, %74, %c0_i32_24 : i32
    %82 = vector.broadcast %81 : i1 to vector<2x256xi1>
    %83 = vector.broadcast %82 : vector<2x256xi1> to vector<2x256xi1>
    %84 = arith.xori %80, %83 : vector<2x256xi1>
    %85 = arith.andi %84, %78 : vector<2x256xi1>
    %86 = vector.broadcast %74 : i32 to vector<2x256xi32>
    %87 = arith.addi %76, %86 : vector<2x256xi32>
    %88 = arith.select %85, %87, %76 : vector<2x256xi1>, vector<2x256xi32>
    %c16_i32_25 = arith.constant 16 : i32
    %89 = vector.broadcast %c16_i32_25 : i32 to vector<2x256xi32>
    %90 = arith.cmpi sge, %72, %89 : vector<2x256xi32>
    %c1_i32_26 = arith.constant 1 : i32
    %91 = vector.broadcast %c1_i32_26 : i32 to vector<2x256xi32>
    %92 = arith.cmpi sge, %88, %91 : vector<2x256xi32>
    %c240_i32 = arith.constant 240 : i32
    %93 = vector.broadcast %c240_i32 : i32 to vector<2x256xi32>
    %94 = arith.cmpi slt, %72, %93 : vector<2x256xi32>
    %c15_i32 = arith.constant 15 : i32
    %95 = vector.broadcast %c15_i32 : i32 to vector<2x256xi32>
    %96 = arith.cmpi slt, %88, %95 : vector<2x256xi32>
    %c0_27 = arith.constant 0 : index
    %97 = memref.load %arg2[%c0_27] : memref<18xf32, #tpu.memory_space<smem>>
    %98 = vector.broadcast %97 : f32 to vector<2x256xf32>
    %99 = arith.mulf %98, %70 : vector<2x256xf32>
    %c9 = arith.constant 9 : index
    %100 = memref.load %arg2[%c9] : memref<18xf32, #tpu.memory_space<smem>>
    %101 = vector.broadcast %100 : f32 to vector<2x256xf32>
    %102 = arith.mulf %101, %71 : vector<2x256xf32>
    %103 = arith.addf %99, %102 : vector<2x256xf32>
    %c17_i32 = arith.constant 17 : i32
    %104 = tpu.dynamic_rotate %103 by %c17_i32 dim 1 : vector<2x256xf32>, i32 -> vector<2x256xf32>
    %105 = arith.andi %90, %92 : vector<2x256xi1>
    %cst_28 = arith.constant 0.000000e+00 : f32
    %106 = vector.broadcast %cst_28 : f32 to vector<2x256xf32>
    %107 = arith.select %105, %104, %106 : vector<2x256xi1>, vector<2x256xf32>
    %c1_29 = arith.constant 1 : index
    %108 = memref.load %arg2[%c1_29] : memref<18xf32, #tpu.memory_space<smem>>
    %109 = vector.broadcast %108 : f32 to vector<2x256xf32>
    %110 = arith.mulf %109, %70 : vector<2x256xf32>
    %c10 = arith.constant 10 : index
    %111 = memref.load %arg2[%c10] : memref<18xf32, #tpu.memory_space<smem>>
    %112 = vector.broadcast %111 : f32 to vector<2x256xf32>
    %113 = arith.mulf %112, %71 : vector<2x256xf32>
    %114 = arith.addf %110, %113 : vector<2x256xf32>
    %c16_i32_30 = arith.constant 16 : i32
    %115 = tpu.dynamic_rotate %114 by %c16_i32_30 dim 1 : vector<2x256xf32>, i32 -> vector<2x256xf32>
    %cst_31 = arith.constant 0.000000e+00 : f32
    %116 = vector.broadcast %cst_31 : f32 to vector<2x256xf32>
    %117 = arith.select %90, %115, %116 : vector<2x256xi1>, vector<2x256xf32>
    %118 = arith.addf %107, %117 : vector<2x256xf32>
    %c2_32 = arith.constant 2 : index
    %119 = memref.load %arg2[%c2_32] : memref<18xf32, #tpu.memory_space<smem>>
    %120 = vector.broadcast %119 : f32 to vector<2x256xf32>
    %121 = arith.mulf %120, %70 : vector<2x256xf32>
    %c11 = arith.constant 11 : index
    %122 = memref.load %arg2[%c11] : memref<18xf32, #tpu.memory_space<smem>>
    %123 = vector.broadcast %122 : f32 to vector<2x256xf32>
    %124 = arith.mulf %123, %71 : vector<2x256xf32>
    %125 = arith.addf %121, %124 : vector<2x256xf32>
    %c15_i32_33 = arith.constant 15 : i32
    %126 = tpu.dynamic_rotate %125 by %c15_i32_33 dim 1 : vector<2x256xf32>, i32 -> vector<2x256xf32>
    %127 = arith.andi %90, %96 : vector<2x256xi1>
    %cst_34 = arith.constant 0.000000e+00 : f32
    %128 = vector.broadcast %cst_34 : f32 to vector<2x256xf32>
    %129 = arith.select %127, %126, %128 : vector<2x256xi1>, vector<2x256xf32>
    %130 = arith.addf %118, %129 : vector<2x256xf32>
    %c3 = arith.constant 3 : index
    %131 = memref.load %arg2[%c3] : memref<18xf32, #tpu.memory_space<smem>>
    %132 = vector.broadcast %131 : f32 to vector<2x256xf32>
    %133 = arith.mulf %132, %70 : vector<2x256xf32>
    %c12 = arith.constant 12 : index
    %134 = memref.load %arg2[%c12] : memref<18xf32, #tpu.memory_space<smem>>
    %135 = vector.broadcast %134 : f32 to vector<2x256xf32>
    %136 = arith.mulf %135, %71 : vector<2x256xf32>
    %137 = arith.addf %133, %136 : vector<2x256xf32>
    %c1_i32_35 = arith.constant 1 : i32
    %138 = tpu.dynamic_rotate %137 by %c1_i32_35 dim 1 : vector<2x256xf32>, i32 -> vector<2x256xf32>
    %cst_36 = arith.constant 0.000000e+00 : f32
    %139 = vector.broadcast %cst_36 : f32 to vector<2x256xf32>
    %140 = arith.select %92, %138, %139 : vector<2x256xi1>, vector<2x256xf32>
    %141 = arith.addf %130, %140 : vector<2x256xf32>
    %c4 = arith.constant 4 : index
    %142 = memref.load %arg2[%c4] : memref<18xf32, #tpu.memory_space<smem>>
    %143 = vector.broadcast %142 : f32 to vector<2x256xf32>
    %144 = arith.mulf %143, %70 : vector<2x256xf32>
    %c13 = arith.constant 13 : index
    %145 = memref.load %arg2[%c13] : memref<18xf32, #tpu.memory_space<smem>>
    %146 = vector.broadcast %145 : f32 to vector<2x256xf32>
    %147 = arith.mulf %146, %71 : vector<2x256xf32>
    %148 = arith.addf %144, %147 : vector<2x256xf32>
    %149 = arith.addf %141, %148 : vector<2x256xf32>
    %c5 = arith.constant 5 : index
    %150 = memref.load %arg2[%c5] : memref<18xf32, #tpu.memory_space<smem>>
    %151 = vector.broadcast %150 : f32 to vector<2x256xf32>
    %152 = arith.mulf %151, %70 : vector<2x256xf32>
    %c14 = arith.constant 14 : index
    %153 = memref.load %arg2[%c14] : memref<18xf32, #tpu.memory_space<smem>>
    %154 = vector.broadcast %153 : f32 to vector<2x256xf32>
    %155 = arith.mulf %154, %71 : vector<2x256xf32>
    %156 = arith.addf %152, %155 : vector<2x256xf32>
    %c255_i32 = arith.constant 255 : i32
    %157 = tpu.dynamic_rotate %156 by %c255_i32 dim 1 : vector<2x256xf32>, i32 -> vector<2x256xf32>
    %cst_37 = arith.constant 0.000000e+00 : f32
    %158 = vector.broadcast %cst_37 : f32 to vector<2x256xf32>
    %159 = arith.select %96, %157, %158 : vector<2x256xi1>, vector<2x256xf32>
    %160 = arith.addf %149, %159 : vector<2x256xf32>
    %c6 = arith.constant 6 : index
    %161 = memref.load %arg2[%c6] : memref<18xf32, #tpu.memory_space<smem>>
    %162 = vector.broadcast %161 : f32 to vector<2x256xf32>
    %163 = arith.mulf %162, %70 : vector<2x256xf32>
    %c15 = arith.constant 15 : index
    %164 = memref.load %arg2[%c15] : memref<18xf32, #tpu.memory_space<smem>>
    %165 = vector.broadcast %164 : f32 to vector<2x256xf32>
    %166 = arith.mulf %165, %71 : vector<2x256xf32>
    %167 = arith.addf %163, %166 : vector<2x256xf32>
    %c241_i32 = arith.constant 241 : i32
    %168 = tpu.dynamic_rotate %167 by %c241_i32 dim 1 : vector<2x256xf32>, i32 -> vector<2x256xf32>
    %169 = arith.andi %94, %92 : vector<2x256xi1>
    %cst_38 = arith.constant 0.000000e+00 : f32
    %170 = vector.broadcast %cst_38 : f32 to vector<2x256xf32>
    %171 = arith.select %169, %168, %170 : vector<2x256xi1>, vector<2x256xf32>
    %172 = arith.addf %160, %171 : vector<2x256xf32>
    %c7 = arith.constant 7 : index
    %173 = memref.load %arg2[%c7] : memref<18xf32, #tpu.memory_space<smem>>
    %174 = vector.broadcast %173 : f32 to vector<2x256xf32>
    %175 = arith.mulf %174, %70 : vector<2x256xf32>
    %c16 = arith.constant 16 : index
    %176 = memref.load %arg2[%c16] : memref<18xf32, #tpu.memory_space<smem>>
    %177 = vector.broadcast %176 : f32 to vector<2x256xf32>
    %178 = arith.mulf %177, %71 : vector<2x256xf32>
    %179 = arith.addf %175, %178 : vector<2x256xf32>
    %c240_i32_39 = arith.constant 240 : i32
    %180 = tpu.dynamic_rotate %179 by %c240_i32_39 dim 1 : vector<2x256xf32>, i32 -> vector<2x256xf32>
    %cst_40 = arith.constant 0.000000e+00 : f32
    %181 = vector.broadcast %cst_40 : f32 to vector<2x256xf32>
    %182 = arith.select %94, %180, %181 : vector<2x256xi1>, vector<2x256xf32>
    %183 = arith.addf %172, %182 : vector<2x256xf32>
    %c8 = arith.constant 8 : index
    %184 = memref.load %arg2[%c8] : memref<18xf32, #tpu.memory_space<smem>>
    %185 = vector.broadcast %184 : f32 to vector<2x256xf32>
    %186 = arith.mulf %185, %70 : vector<2x256xf32>
    %c17 = arith.constant 17 : index
    %187 = memref.load %arg2[%c17] : memref<18xf32, #tpu.memory_space<smem>>
    %188 = vector.broadcast %187 : f32 to vector<2x256xf32>
    %189 = arith.mulf %188, %71 : vector<2x256xf32>
    %190 = arith.addf %186, %189 : vector<2x256xf32>
    %c239_i32 = arith.constant 239 : i32
    %191 = tpu.dynamic_rotate %190 by %c239_i32 dim 1 : vector<2x256xf32>, i32 -> vector<2x256xf32>
    %192 = arith.andi %94, %96 : vector<2x256xi1>
    %cst_41 = arith.constant 0.000000e+00 : f32
    %193 = vector.broadcast %cst_41 : f32 to vector<2x256xf32>
    %194 = arith.select %192, %191, %193 : vector<2x256xi1>, vector<2x256xf32>
    %195 = arith.addf %183, %194 : vector<2x256xf32>
    %196 = arith.negf %195 : vector<2x256xf32>
    %197 = math.exp %196 : vector<2x256xf32>
    %cst_42 = arith.constant 1.000000e+00 : f32
    %198 = vector.broadcast %cst_42 : f32 to vector<2x256xf32>
    %199 = arith.addf %198, %197 : vector<2x256xf32>
    %200 = arith.divf %198, %199 : vector<2x256xf32>
    %c0_43 = arith.constant 0 : index
    %c0_44 = arith.constant 0 : index
    %c0_45 = arith.constant 0 : index
    %201 = vector.load %arg5[%c0_43, %c0_44, %c0_45] : memref<2x4x256xf32, #tpu.memory_space<vmem>>, vector<1x4x256xf32>
    %202 = vector.shape_cast %201 : vector<1x4x256xf32> to vector<4x256xf32>
    %c0_46 = arith.constant 0 : index
    %c0_47 = arith.constant 0 : index
    %203 = vector.load %arg4[%c0_46, %c0_47] : memref<4x1xf32, #tpu.memory_space<vmem>>, vector<4x1xf32>
    %c0_48 = arith.constant 0 : index
    %c0_49 = arith.constant 0 : index
    %204 = vector.load %arg3[%c0_48, %c0_49] : memref<4x4xf32, #tpu.memory_space<vmem>>, vector<4x1xf32>
    %205 = vector.extract_strided_slice %28 {offsets = [0, 0], sizes = [1, 256], strides = [1, 1]} : vector<4x256xf32> to vector<1x256xf32>
    %206 = vector.broadcast %204 : vector<4x1xf32> to vector<4x256xf32>
    %207 = vector.broadcast %205 : vector<1x256xf32> to vector<4x256xf32>
    %208 = arith.mulf %206, %207 : vector<4x256xf32>
    %209 = vector.broadcast %203 : vector<4x1xf32> to vector<4x256xf32>
    %210 = arith.addf %209, %208 : vector<4x256xf32>
    %c0_50 = arith.constant 0 : index
    %c1_51 = arith.constant 1 : index
    %211 = vector.load %arg3[%c0_50, %c1_51] : memref<4x4xf32, #tpu.memory_space<vmem>>, vector<4x1xf32>
    %212 = vector.extract_strided_slice %28 {offsets = [1, 0], sizes = [1, 256], strides = [1, 1]} : vector<4x256xf32> to vector<1x256xf32>
    %213 = vector.broadcast %211 : vector<4x1xf32> to vector<4x256xf32>
    %214 = vector.broadcast %212 : vector<1x256xf32> to vector<4x256xf32>
    %215 = arith.mulf %213, %214 : vector<4x256xf32>
    %216 = arith.addf %210, %215 : vector<4x256xf32>
    %c0_52 = arith.constant 0 : index
    %c2_53 = arith.constant 2 : index
    %217 = vector.load %arg3[%c0_52, %c2_53] : memref<4x4xf32, #tpu.memory_space<vmem>>, vector<4x1xf32>
    %218 = vector.extract_strided_slice %28 {offsets = [2, 0], sizes = [1, 256], strides = [1, 1]} : vector<4x256xf32> to vector<1x256xf32>
    %219 = vector.broadcast %217 : vector<4x1xf32> to vector<4x256xf32>
    %220 = vector.broadcast %218 : vector<1x256xf32> to vector<4x256xf32>
    %221 = arith.mulf %219, %220 : vector<4x256xf32>
    %222 = arith.addf %216, %221 : vector<4x256xf32>
    %c0_54 = arith.constant 0 : index
    %c3_55 = arith.constant 3 : index
    %223 = vector.load %arg3[%c0_54, %c3_55] : memref<4x4xf32, #tpu.memory_space<vmem>>, vector<4x1xf32>
    %224 = vector.extract_strided_slice %28 {offsets = [3, 0], sizes = [1, 256], strides = [1, 1]} : vector<4x256xf32> to vector<1x256xf32>
    %225 = vector.broadcast %223 : vector<4x1xf32> to vector<4x256xf32>
    %226 = vector.broadcast %224 : vector<1x256xf32> to vector<4x256xf32>
    %227 = arith.mulf %225, %226 : vector<4x256xf32>
    %228 = arith.addf %222, %227 : vector<4x256xf32>
    %229 = arith.negf %228 : vector<4x256xf32>
    %230 = math.exp %229 : vector<4x256xf32>
    %cst_56 = arith.constant 1.000000e+00 : f32
    %231 = vector.broadcast %cst_56 : f32 to vector<4x256xf32>
    %232 = arith.addf %231, %230 : vector<4x256xf32>
    %233 = arith.divf %231, %232 : vector<4x256xf32>
    %234 = arith.mulf %28, %233 : vector<4x256xf32>
    %235 = arith.addf %234, %202 : vector<4x256xf32>
    %236 = vector.extract_strided_slice %200 {offsets = [0, 0], sizes = [1, 256], strides = [1, 1]} : vector<2x256xf32> to vector<1x256xf32>
    %237 = vector.broadcast %236 : vector<1x256xf32> to vector<4x256xf32>
    %238 = arith.mulf %28, %237 : vector<4x256xf32>
    %239 = arith.addf %238, %202 : vector<4x256xf32>
    %240 = tpu.concatenate %235, %239 in 0 : vector<4x256xf32>, vector<4x256xf32> -> vector<8x256xf32>
    %c0_57 = arith.constant 0 : index
    %c0_58 = arith.constant 0 : index
    %c0_59 = arith.constant 0 : index
    %241 = vector.load %arg6[%c0_57, %c0_58, %c0_59] : memref<2x8x256xf32, #tpu.memory_space<vmem>>, vector<1x8x256xf32>
    %242 = vector.shape_cast %241 : vector<1x8x256xf32> to vector<8x256xf32>
    %243 = vector.shape_cast %240 : vector<8x256xf32> to vector<1x8x256xf32>
    tpu.vector_store %arg6[%c0_57, %c0_58, %c0_59], %243 {strides = array<i32>} : memref<2x8x256xf32, #tpu.memory_space<vmem>>, vector<1x8x256xf32>,
    %c1_60 = arith.constant 1 : index
    %c0_61 = arith.constant 0 : index
    %c0_62 = arith.constant 0 : index
    %244 = vector.load %arg5[%c1_60, %c0_61, %c0_62] : memref<2x4x256xf32, #tpu.memory_space<vmem>>, vector<1x4x256xf32>
    %245 = vector.shape_cast %244 : vector<1x4x256xf32> to vector<4x256xf32>
    %c0_63 = arith.constant 0 : index
    %c0_64 = arith.constant 0 : index
    %246 = vector.load %arg4[%c0_63, %c0_64] : memref<4x1xf32, #tpu.memory_space<vmem>>, vector<4x1xf32>
    %c0_65 = arith.constant 0 : index
    %c0_66 = arith.constant 0 : index
    %247 = vector.load %arg3[%c0_65, %c0_66] : memref<4x4xf32, #tpu.memory_space<vmem>>, vector<4x1xf32>
    %248 = vector.extract_strided_slice %57 {offsets = [0, 0], sizes = [1, 256], strides = [1, 1]} : vector<4x256xf32> to vector<1x256xf32>
    %249 = vector.broadcast %247 : vector<4x1xf32> to vector<4x256xf32>
    %250 = vector.broadcast %248 : vector<1x256xf32> to vector<4x256xf32>
    %251 = arith.mulf %249, %250 : vector<4x256xf32>
    %252 = vector.broadcast %246 : vector<4x1xf32> to vector<4x256xf32>
    %253 = arith.addf %252, %251 : vector<4x256xf32>
    %c0_67 = arith.constant 0 : index
    %c1_68 = arith.constant 1 : index
    %254 = vector.load %arg3[%c0_67, %c1_68] : memref<4x4xf32, #tpu.memory_space<vmem>>, vector<4x1xf32>
    %255 = vector.extract_strided_slice %57 {offsets = [1, 0], sizes = [1, 256], strides = [1, 1]} : vector<4x256xf32> to vector<1x256xf32>
    %256 = vector.broadcast %254 : vector<4x1xf32> to vector<4x256xf32>
    %257 = vector.broadcast %255 : vector<1x256xf32> to vector<4x256xf32>
    %258 = arith.mulf %256, %257 : vector<4x256xf32>
    %259 = arith.addf %253, %258 : vector<4x256xf32>
    %c0_69 = arith.constant 0 : index
    %c2_70 = arith.constant 2 : index
    %260 = vector.load %arg3[%c0_69, %c2_70] : memref<4x4xf32, #tpu.memory_space<vmem>>, vector<4x1xf32>
    %261 = vector.extract_strided_slice %57 {offsets = [2, 0], sizes = [1, 256], strides = [1, 1]} : vector<4x256xf32> to vector<1x256xf32>
    %262 = vector.broadcast %260 : vector<4x1xf32> to vector<4x256xf32>
    %263 = vector.broadcast %261 : vector<1x256xf32> to vector<4x256xf32>
    %264 = arith.mulf %262, %263 : vector<4x256xf32>
    %265 = arith.addf %259, %264 : vector<4x256xf32>
    %c0_71 = arith.constant 0 : index
    %c3_72 = arith.constant 3 : index
    %266 = vector.load %arg3[%c0_71, %c3_72] : memref<4x4xf32, #tpu.memory_space<vmem>>, vector<4x1xf32>
    %267 = vector.extract_strided_slice %57 {offsets = [3, 0], sizes = [1, 256], strides = [1, 1]} : vector<4x256xf32> to vector<1x256xf32>
    %268 = vector.broadcast %266 : vector<4x1xf32> to vector<4x256xf32>
    %269 = vector.broadcast %267 : vector<1x256xf32> to vector<4x256xf32>
    %270 = arith.mulf %268, %269 : vector<4x256xf32>
    %271 = arith.addf %265, %270 : vector<4x256xf32>
    %272 = arith.negf %271 : vector<4x256xf32>
    %273 = math.exp %272 : vector<4x256xf32>
    %cst_73 = arith.constant 1.000000e+00 : f32
    %274 = vector.broadcast %cst_73 : f32 to vector<4x256xf32>
    %275 = arith.addf %274, %273 : vector<4x256xf32>
    %276 = arith.divf %274, %275 : vector<4x256xf32>
    %277 = arith.mulf %57, %276 : vector<4x256xf32>
    %278 = arith.addf %277, %245 : vector<4x256xf32>
    %279 = vector.extract_strided_slice %200 {offsets = [1, 0], sizes = [1, 256], strides = [1, 1]} : vector<2x256xf32> to vector<1x256xf32>
    %280 = vector.broadcast %279 : vector<1x256xf32> to vector<4x256xf32>
    %281 = arith.mulf %57, %280 : vector<4x256xf32>
    %282 = arith.addf %281, %245 : vector<4x256xf32>
    %283 = tpu.concatenate %278, %282 in 0 : vector<4x256xf32>, vector<4x256xf32> -> vector<8x256xf32>
    %c1_74 = arith.constant 1 : index
    %c0_75 = arith.constant 0 : index
    %c0_76 = arith.constant 0 : index
    %284 = vector.load %arg6[%c1_74, %c0_75, %c0_76] : memref<2x8x256xf32, #tpu.memory_space<vmem>>, vector<1x8x256xf32>
    %285 = vector.shape_cast %284 : vector<1x8x256xf32> to vector<8x256xf32>
    %286 = vector.shape_cast %283 : vector<8x256xf32> to vector<1x8x256xf32>
    tpu.vector_store %arg6[%c1_74, %c0_75, %c0_76], %286 {strides = array<i32>} : memref<2x8x256xf32, #tpu.memory_space<vmem>>, vector<1x8x256xf32>,
    return
  }
  func.func @transform_0(%arg0: i32) -> i32 {
    %c0_i32 = arith.constant 0 : i32
    %c0_i32_0 = arith.constant 0 : i32
    return %c0_i32 : i32
  }
  func.func @transform_1(%arg0: i32) -> i32 {
    %c0_i32 = arith.constant 0 : i32
    %c0_i32_0 = arith.constant 0 : i32
    return %c0_i32 : i32
  }
  func.func @transform_2(%arg0: i32) -> (i32, i32) {
    %c0_i32 = arith.constant 0 : i32
    %c0_i32_0 = arith.constant 0 : i32
    %c0_i32_1 = arith.constant 0 : i32
    return %c0_i32, %c0_i32_0 : i32, i32
  }
  func.func @transform_3(%arg0: i32) -> (i32, i32) {
    %c0_i32 = arith.constant 0 : i32
    %c0_i32_0 = arith.constant 0 : i32
    %c0_i32_1 = arith.constant 0 : i32
    return %c0_i32, %c0_i32_0 : i32, i32
  }
  func.func @transform_4(%arg0: i32) -> (i32, i32, i32) {
    %c0_i32 = arith.constant 0 : i32
    %c0_i32_0 = arith.constant 0 : i32
    %c0_i32_1 = arith.constant 0 : i32
    return %arg0, %c0_i32, %c0_i32_0 : i32, i32, i32
  }
  func.func @transform_5(%arg0: i32) -> (i32, i32, i32) {
    %c0_i32 = arith.constant 0 : i32
    %c0_i32_0 = arith.constant 0 : i32
    %c0_i32_1 = arith.constant 0 : i32
    return %arg0, %c0_i32, %c0_i32_0 : i32, i32, i32
  }
}

</mosaic_0001>

<bundles_post_ra>
// kernel: tpu_custom_call.1
= control target key start
LH: loop header
LB: loop body
LE: loop exit
PB: predicated region body
PF: predicated region fallthrough
CT: control target
= control target key end

     0   :  { %10 = vsyncpa [#allocation5], 0  ;;  %s1408_s0 = inlined_call_operand.vmem [shape: f32[3], index: 0, kind: input, shape index: {}]   ;;  %s1409_s1 = inlined_call_operand.vmem [shape: f32[18], index: 1, kind: input, shape index: {}]   ;;  %s1410_s2 = inlined_call_operand.vmem [shape: f32[4,4], index: 2, kind: input, shape index: {}]   ;;  %s1411_s3 = inlined_call_operand.vmem [shape: f32[4,1], index: 3, kind: input, shape index: {}]   ;;  %s1412_s4 = inlined_call_operand.hbm [shape: f32[2,4,256], index: 4, kind: input, shape index: {}]   ;;  %s1413_s5 = inlined_call_operand.hbm [shape: f32[2,8,256], index: 5, kind: output, shape index: {}]  }
   0x1   :  { %11 = vsyncpa [#allocation7], 0 }
   0x2   :  { %12 = vsyncpa [#allocation3], 0 }
   0x3   :  { %13 = vsyncpa [#allocation4], 0  ;;  %s20_s20 = sshll.u32 %s1408_s0, 4  ;;  %s30_s23 = sshll.u32 %s1409_s1, 4  ;;  %s21_s20 = int_to_ptr.vmem [resolvable:$true] %s20_s20  ;;  %s31_s23 = int_to_ptr.vmem [resolvable:$true] %s30_s23 }
   0x4   :  { %s882_s24 = scalar_lea.vmem %s21_s20, 16  ;;  %p887_p1 = scmp.lt.s32.totalorder %s21_s20, %s21_s20 }
   0x5   :  { %p883_p0 = scmp.ne.s32.totalorder %s21_s20, %s882_s24  ;;  %p888_p2 = scmp.lt.s32.totalorder %s882_s24, %s882_s24 }
   0x7   :  { %p889_p3 = por %p888_p2, %p887_p1 }
   0x9   :  { %p890_p4 = pnand %p889_p3, %p883_p0 }
   0xb   :  { %893 = shalt.err (!%p890_p4)
}
   0xc   :  { %s954_s25 = smov [#allocation2]   ;;  %s894_s26 = scalar_lea.vmem %s31_s23, 16 }
   0xd   :  { %23 = dma.vmem_to_smem %s21_s20, 16, %s954_s25, [#allocation5]  }
   0xe   :  { %p895_p5 = scmp.ne.s32.totalorder %s31_s23, %s894_s26  ;;  %p899_p6 = scmp.lt.s32.totalorder %s31_s23, %s31_s23 }
   0xf   :  { %p900_p7 = scmp.lt.s32.totalorder %s894_s26, %s894_s26 }
  0x11   :  { %p901_p8 = por %p900_p7, %p899_p6 }
  0x13   :  { %p902_p9 = pnand %p901_p8, %p895_p5 }
  0x15   :  { %905 = shalt.err (!%p902_p9)
}
  0x16   :  { %s955_s0 = smov [#allocation6]   ;;  %s956_s1 = smov [#allocation8]  }
  0x17   :  { %33 = dma.vmem_to_smem %s31_s23, 16, %s955_s0, [#allocation7]  }
  0x18   :  { %s43_s27 = sshll.u32 %s956_s1, 4  ;;  %s44_s27 = int_to_ptr.vmem [resolvable:$true] %s43_s27 }
  0x19   :  { %s914_s28 = scalar_lea.vmem %s44_s27, 256  ;;  %p919_p11 = scmp.lt.s32.totalorder %s44_s27, %s44_s27 }
  0x1a   :  { %p915_p10 = scmp.ne.s32.totalorder %s44_s27, %s914_s28  ;;  %p920_p12 = scmp.lt.s32.totalorder %s914_s28, %s914_s28 }
  0x1c   :  { %p921_p13 = por %p920_p12, %p919_p11 }
  0x1e   :  { %p922_p0 = pnand %p921_p13, %p915_p10 }
  0x20   :  { %925 = shalt.err (!%p922_p0)
}
  0x21   :  { %s957_s29 = smov 128   ;;  %s958_s30 = smov 8  }
  0x22   :  { %49 = dma.hbm_to_vmem [thread:$0]  %s1412_s4, 256, %s44_s27, [#allocation3], %s957_s29, %s957_s29, %s958_s30  }
  0x23   :  { %946 = dma.done.wait [#allocation5], 16  }
  0x24   :  { %947 = vsyncadd [#allocation5], 4294967280 }
  0x25   :  { %948 = dma.done.wait [#allocation7], 16  }
  0x26   :  { %949 = vsyncadd [#allocation7], 4294967280 }
  0x27   :  { %950 = dma.done.wait [#allocation3], 256  }
  0x28   :  { %951 = vsyncadd [#allocation3], 4294967040 }
  0x29   :  { %59 = sfence }
  0x2a   :  { %v1013_v0 = vld [vmem:[#allocation8] sm:$0xff]  ;;  %vm64_vm0 = vcmask 1043456   ;;  %v1015_v1 = vld [vmem:[#allocation8 + $0x8] sm:$0xff]  ;;  %v959_v11 = vmov 0   ;;  %v960_v14 = vmov 2   ;;  %v961_v15 = vmov 3  }
  0x2b   :  { %v62_v2 = vcombine.high %v1013_v0, %v1013_v0  ;;  %v65_v3 = vsel %vm64_vm0, %v1013_v0, 0.0  ;;  %v118_v4 = vcombine.high %v1015_v1, %v1015_v1  ;;  %v120_v6 = vsel %vm64_vm0, %v1015_v1, 0.0  ;;  %v1030_v10 = vld [vmem:[%s1410_s2] sm:$0xf]  ;;  %842 = vset.pattern.permute.xlu0 %v959_v11  ;;  %841 = vset.pattern.permute.xlu1 %v959_v11  ;;  %s794_s13 = sld [smem:[#allocation2 + $0x1]]  ;;  %s964_s1 = smov 16  }
  0x2c   :  { %v620_v12 = vld [vmem:[%s1411_s3] sm:$0xf]  ;;  %s795_s14 = sld [smem:[#allocation2 + $0x2]]  ;;  %vm75_vm1 = vcmask 1040384   ;;  %vm77_vm2 = vcmask 1044480   ;;  %v962_v52 = vmov 1   ;;  %v109_v55 = vlaneseq }
  0x2d   :  { %v66_v5 = vsel %vm64_vm0, %v62_v2, 0.0  ;;  %v121_v7 = vsel %vm64_vm0, %v118_v4, 0.0  ;;  %v466_v13 = vld [vmem:[%s1410_s2] sm:$0xf]  ;;  %s79_s15 = sld [smem:[#allocation2]]  ;;  %s965_s27 = smov 17  }
  0x2e   :  { %v67_v8 = vadd.f32 %v66_v5, %v65_v3  ;;  %v122_v9 = vadd.f32 %v121_v7, %v120_v6  ;;  %v465_v51 = vld [vmem:[%s1411_s3] sm:$0xf]  ;;  %v963_v53 = vmov 839922192   ;;  %v1047_v57 = vshrl.u32 %v109_v55, 7  ;;  %s1064_s3 = sld [smem:[#allocation6 + $0xa]] }
  0x2f   :  { %v107_v54 = vunpack.c.l.s4 %v963_v53  ;;  %s1066_s17 = sld [smem:[#allocation6 + $0x1]]  ;;  %s966_s28 = smov 15  }
  0x30   :  { %68 = vadd.xlane.f32.xlu0 %v67_v8  ;;  %s1068_s18 = sld [smem:[#allocation6 + $0x9]]  ;;  %s967_s29 = smov 127  }
  0x31   :  { %v83_v19 = vstv %s794_s13  ;;  %v108_v56 = vunpack.c.0.s8 %v107_v54  ;;  %s1072_s19 = sld [smem:[#allocation6]]  ;;  %s968_s6 = smov 1  }
  0x32   :  { %v90_v20 = vstv %s795_s14  ;;  %s1076_s20 = sld [smem:[#allocation6 + $0x2]]  ;;  %s969_s4 = smov 113  }
  0x33   :  { %v80_v24 = vstv %s79_s15  ;;  %v111_v58 = vsub.s32 %v108_v56, %v1047_v57  ;;  %s1078_s21 = sld [smem:[#allocation6 + $0x5]]  ;;  %s970_s12 = smov 111  }
  0x34   :  { %123 = vadd.xlane.f32.xlu0 %v122_v9  ;;  %s1081_s22 = sld [smem:[#allocation6 + $0xb]]  ;;  %s971_s13 = smov 112  }
  0x35   :  { %s1084_s23 = sld [smem:[#allocation6 + $0xe]]  ;;  %s972_s14 = smov [#allocation9]  }
  0x36   :  { %s1088_s24 = sld [smem:[#allocation6 + $0x3]]  ;;  %s780_s15 = sshll.u32 %s972_s14, 4  ;;  %s781_s15 = int_to_ptr.vmem [resolvable:$true] %s780_s15 }
  0x37   :  { %s1093_s25 = sld [smem:[#allocation6 + $0xc]]  ;;  %s926_s2 = scalar_lea.vmem %s781_s15, 512 }
  0x38   :  { %s1106_s26 = sld [smem:[#allocation6 + $0x6]]  ;;  %p927_p1 = scmp.ne.s32.totalorder %s781_s15, %s926_s2 }
  0x39   :  { %s1120_s0 = sld [smem:[#allocation6 + $0xf]]  ;;  %p931_p2 = scmp.lt.s32.totalorder %s781_s15, %s781_s15 }
  0x3a   :  { %s1145_s30 = sld [smem:[#allocation6 + $0x4]]  ;;  %p932_p3 = scmp.lt.s32.totalorder %s926_s2, %s926_s2 }
  0x3b   :  { %s806_s7 = sld [smem:[#allocation6 + $0xd]] }
  0x3c   :  { %s1152_s8 = sld [smem:[#allocation6 + $0x8]]  ;;  %p933_p4 = por %p932_p3, %p931_p2 }
  0x3d   :  { %s1155_s9 = sld [smem:[#allocation6 + $0x7]] }
  0x3e   :  { %s1159_s10 = sld [smem:[#allocation6 + $0x11]]  ;;  %p934_p5 = pnand %p933_p4, %p927_p1 }
  0x3f   :  { %s1161_s11 = sld [smem:[#allocation6 + $0x10]] }
  0x4a   :  { %624 = vperm.xlu0 %842, %v1030_v10  }
  0x4e   :  { %649 = vperm.xlu0 %842, %v620_v12  }
  0x52   :  { %844 = vset.pattern.permute.xlu0 %v960_v14 }
  0x53   :  { %526 = vperm.xlu0 %844, %v466_v13  }
  0x57   :  { %847 = vset.pattern.permute.xlu0 %v961_v15 }
  0xb9   :  { %v69_v16 = vpop.xlane.xlu0 %68 }
  0xba   :  { %v71_v17 = vmul.f32 0.00390625, %v69_v16 }
  0xbc   :  { %v73_v18 = vrot.slane %v71_v17, 7 }
  0xbd   :  { %v124_v21 = vpop.xlane.xlu0 %123 }
  0xbe   :  { %v76_v22 = vsel %vm75_vm1, 0.0, %v73_v18  ;;  %v125_v23 = vmul.f32 0.00390625, %v124_v21 }
  0xbf   :  { %v78_v25 = vsel %vm77_vm2, %v76_v22, 0.0 }
  0xc0   :  { %v84_v26 = vmul.f32 %v83_v19, %v78_v25  ;;  %v91_v27 = vmul.f32 %v90_v20, %v78_v25  ;;  %v127_v28 = vrot.slane %v125_v23, 7  ;;  %v81_v29 = vmul.f32 %v80_v24, %v78_v25 }
  0xc2   :  { %v86_v30 = vrot.slane %v84_v26, 1  ;;  %v129_v31 = vsel %vm75_vm1, 0.0, %v127_v28  ;;  %v93_v34 = vrot.slane %v91_v27, 2 }
  0xc3   :  { %v130_v32 = vsel %vm77_vm2, %v129_v31, 0.0 }
  0xc4   :  { %v88_v33 = vadd.f32 %v86_v30, %v81_v29  ;;  %v132_v35 = vmul.f32 %v130_v32, %v83_v19  ;;  %v137_v36 = vmul.f32 %v130_v32, %v90_v20  ;;  %v131_v38 = vmul.f32 %v130_v32, %v80_v24 }
  0xc5   :  { %v289_v32 = vstv %s1066_s17 }
  0xc6   :  { %v95_v37 = vadd.f32 %v93_v34, %v88_v33  ;;  %v134_v39 = vrot.slane %v132_v35, 1  ;;  %v139_v42 = vrot.slane %v137_v36, 2  ;;  %v293_v33 = vstv %s1064_s3 }
  0xc8   :  { %v796_v40 = vmul.f32 -1.442695, %v95_v37  ;;  %v136_v41 = vadd.f32 %v134_v39, %v131_v38 }
  0xca   :  { %850 = vpow2.f32 %v796_v40  ;;  %v141_v43 = vadd.f32 %v139_v42, %v136_v41 }
  0xcc   :  { %v797_v44 = vmul.f32 -1.442695, %v141_v43 }
  0xce   :  { %852 = vpow2.f32 %v797_v44 }
  0xd7   :  { %v851_v45 = vpop.eup %850 }
  0xd8   :  { %v99_v46 = vadd.f32 1.0, %v851_v45  ;;  %v268_v45 = vstv %s1072_s19 }
  0xda   :  { %854 = vrcp.f32 %v99_v46  ;;  %v272_v46 = vstv %s1068_s18 }
  0xdb   :  { %v853_v47 = vpop.eup %852 }
  0xdc   :  { %v145_v48 = vadd.f32 1.0, %v853_v47 }
  0xde   :  { %856 = vrcp.f32 %v145_v48  ;;  %v310_v48 = vstv %s1076_s20 }
  0xe7   :  { %v855_v49 = vpop.eup %854 }
  0xe8   :  { %104 = vperm.xlu1 %841, %v855_v49   ;;  %v366_v49 = vstv %s1078_s21 }
  0xeb   :  { %v857_v50 = vpop.eup %856 }
  0xec   :  { %150 = vperm.xlu1 %841, %v857_v50  }
  0xf0   :  { %469 = vperm.xlu1 %841, %v466_v13  }
  0xf4   :  { %494 = vperm.xlu1 %841, %v465_v51  }
  0xf8   :  { %843 = vset.pattern.permute.xlu1 %v962_v52 }
  0xf9   :  { %500 = vperm.xlu1 %843, %v466_v13  }
  0xfd   :  { %655 = vperm.xlu1 %843, %v1030_v10  }
 0x101   :  { %845 = vset.pattern.permute.xlu1 %v960_v14 }
 0x102   :  { %681 = vperm.xlu1 %845, %v1030_v10  }
 0x106   :  { %846 = vset.pattern.permute.xlu1 %v961_v15 }
 0x107   :  { %552 = vperm.xlu1 %846, %v466_v13  }
 0x163   :  { %v105_v59 = vpop.permute.xlu1 %104 }
 0x164   :  { %v112_v60 = vrot.slane %v105_v59, %v111_v58 }
 0x166   :  { %v1051_v61 = vmul.f32 %v112_v60, %v1013_v0  ;;  %v314_v60 = vstv %s1081_s22 }
 0x167   :  { %v151_v62 = vpop.permute.xlu1 %150 }
 0x168   :  { %v158_v63 = vrot.slane %v151_v62, %v111_v58  ;;  %v164_v2 = vsel %vm64_vm0, %v1051_v61, 0.0  ;;  %v200_v9 = vsel %vm64_vm0, %v1051_v61, -inf  ;;  %v162_v16 = vcombine.high %v1051_v61, %v1051_v61 }
 0x169   :  { %v165_v4 = vrot.slane %v164_v2, 4  ;;  %v201_v14 = vrot.slane %v200_v9, 4  ;;  %v370_v62 = vstv %s1084_s23 }
 0x16a   :  { %v1056_v3 = vmul.f32 %v158_v63, %v1015_v1  ;;  %v171_v25 = vsel %vm64_vm0, %v162_v16, 0.0  ;;  %v207_v38 = vsel %vm64_vm0, %v162_v16, -inf }
 0x16b   :  { %v166_v5 = vadd.f32 %v165_v4, %v164_v2  ;;  %v202_v20 = vmax.f32 %v200_v9, %v201_v14  ;;  %v172_v34 = vrot.slane %v171_v25, 4  ;;  %v208_v42 = vrot.slane %v207_v38, 4 }
 0x16c   :  { %v184_v6 = vsel %vm64_vm0, %v1056_v3, 0.0  ;;  %v214_v11 = vsel %vm64_vm0, %v1056_v3, -inf  ;;  %v182_v19 = vcombine.high %v1056_v3, %v1056_v3  ;;  %v337_v14 = vstv %s1093_s25 }
 0x16d   :  { %v167_v7 = vrot.slane %v166_v5, 2  ;;  %v185_v8 = vrot.slane %v184_v6, 4  ;;  %v215_v15 = vrot.slane %v214_v11, 4  ;;  %v203_v23 = vrot.slane %v202_v20, 2 }
 0x16e   :  { %v191_v28 = vsel %vm64_vm0, %v182_v19, 0.0  ;;  %v173_v41 = vadd.f32 %v172_v34, %v171_v25  ;;  %v209_v59 = vmax.f32 %v207_v38, %v208_v42  ;;  %v221_v63 = vsel %vm64_vm0, %v182_v19, -inf }
 0x16f   :  { %v168_v12 = vadd.f32 %v167_v7, %v166_v5  ;;  %v186_v13 = vadd.f32 %v185_v8, %v184_v6  ;;  %v216_v21 = vmax.f32 %v214_v11, %v215_v15  ;;  %v204_v29 = vmax.f32 %v202_v20, %v203_v23 }
 0x170   :  { %v192_v37 = vrot.slane %v191_v28, 4  ;;  %v174_v52 = vrot.slane %v173_v41, 2  ;;  %v333_v7 = vstv %s1088_s24  ;;  %v222_v16 = vrot.slane %v221_v63, 4 }
 0x171   :  { %v169_v17 = vrot.slane %v168_v12, 1  ;;  %v187_v18 = vrot.slane %v186_v13, 2  ;;  %v217_v24 = vrot.slane %v216_v21, 2  ;;  %v205_v35 = vrot.slane %v204_v29, 1 }
 0x172   :  { %v193_v53 = vadd.f32 %v192_v37, %v191_v28  ;;  %v175_v8 = vadd.f32 %v174_v52, %v173_v41  ;;  %v387_v23 = vstv %s1106_s26  ;;  %v391_v28 = vstv %s1120_s0 }
 0x173   :  { %v188_v22 = vadd.f32 %v187_v18, %v186_v13  ;;  %v170_v26 = vadd.f32 %v169_v17, %v168_v12  ;;  %v218_v30 = vmax.f32 %v216_v21, %v217_v24  ;;  %v206_v43 = vmax.f32 %v204_v29, %v205_v35 }
 0x174   :  { %v194_v12 = vrot.slane %v193_v53, 2  ;;  %v210_v13 = vrot.slane %v209_v59, 2  ;;  %v176_v15 = vrot.slane %v175_v8, 1 }
 0x175   :  { %v189_v27 = vrot.slane %v188_v22, 1  ;;  %v219_v36 = vrot.slane %v218_v30, 1  ;;  %v179_v39 = vmul.f32 0.25, %v170_v26 }
 0x176   :  { %v195_v20 = vadd.f32 %v194_v12, %v193_v53  ;;  %v211_v21 = vmax.f32 %v209_v59, %v210_v13  ;;  %v177_v25 = vadd.f32 %v176_v15, %v175_v8  ;;  %v435_v15 = vstv %s1159_s10 }
 0x177   :  { %v190_v31 = vadd.f32 %v189_v27, %v188_v22  ;;  %v220_v44 = vmax.f32 %v218_v30, %v219_v36  ;;  %v223_v22 = vmax.f32 %v221_v63, %v222_v16  ;;  %v358_v63 = vstv %s806_s7 }
 0x178   :  { %v196_v26 = vrot.slane %v195_v20, 1  ;;  %v212_v34 = vrot.slane %v211_v21, 1  ;;  %v180_v36 = vmul.f32 0.25, %v177_v25  ;;  %v414_v16 = vstv %s1161_s11 }
 0x179   :  { %v198_v40 = vmul.f32 0.25, %v190_v31  ;;  %v1101_v50 = vsel %vm75_vm1, %v206_v43, %v220_v44  ;;  %v224_v27 = vrot.slane %v223_v22, 2 }
 0x17a   :  { %v294_v54 = vmul.f32 %v293_v33, %v1101_v50  ;;  %v273_v58 = vmul.f32 %v272_v46, %v1101_v50  ;;  %v315_v9 = vmul.f32 %v314_v60, %v1101_v50  ;;  %v371_v11 = vmul.f32 %v370_v62, %v1101_v50 }
 0x17b   :  { %v1096_v47 = vsel %vm75_vm1, %v179_v39, %v198_v40  ;;  %v338_v24 = vmul.f32 %v337_v14, %v1101_v50  ;;  %v197_v30 = vadd.f32 %v196_v26, %v195_v20  ;;  %v225_v35 = vmax.f32 %v223_v22, %v224_v27 }
 0x17c   :  { %v290_v51 = vmul.f32 %v289_v32, %v1096_v47  ;;  %v269_v56 = vmul.f32 %v268_v45, %v1096_v47  ;;  %v311_v5 = vmul.f32 %v310_v48, %v1096_v47  ;;  %v367_v6 = vmul.f32 %v366_v49, %v1096_v47 }
 0x17d   :  { %v334_v19 = vmul.f32 %v333_v7, %v1096_v47  ;;  %v388_v31 = vmul.f32 %v387_v23, %v1096_v47  ;;  %v199_v37 = vmul.f32 0.25, %v197_v30  ;;  %v392_v38 = vmul.f32 %v391_v28, %v1101_v50 }
 0x17e   :  { %v296_v2 = vadd.f32 %v294_v54, %v290_v51  ;;  %v275_v4 = vadd.f32 %v273_v58, %v269_v56  ;;  %v317_v17 = vadd.f32 %v315_v9, %v311_v5  ;;  %v373_v18 = vadd.f32 %v371_v11, %v367_v6 }
 0x17f   :  { %v340_v29 = vadd.f32 %v338_v24, %v334_v19  ;;  %v226_v39 = vrot.slane %v225_v35, 1  ;;  %v229_v40 = vsel %vm75_vm1, %v180_v36, %v199_v37  ;;  %v394_v41 = vadd.f32 %v392_v38, %v388_v31 }
 0x180   :  { %298 = vrot.lane.b32.xlu1 %v296_v2, %s964_s1  ;;  %277 = vrot.lane.b32.xlu0 %v275_v4, %s965_s27  ;;  %v213_v42 = vmax.f32 %v211_v21, %v212_v34  ;;  %v335_v44 = vmul.f32 %v333_v7, %v229_v40  ;;  %v270_v51 = vmul.f32 %v268_v45, %v229_v40  ;;  %v354_v56 = vstv %s1145_s30 }
 0x181   :  { %v227_v43 = vmax.f32 %v225_v35, %v226_v39  ;;  %v291_v45 = vmul.f32 %v289_v32, %v229_v40  ;;  %v356_v4 = vmul.f32 %v354_v56, %v229_v40  ;;  %v359_v5 = vmul.f32 %v358_v63, %v1101_v50  ;;  %v625_v35 = vpop.permute.xlu0 %624 }
 0x182   :  { %v389_v7 = vmul.f32 %v387_v23, %v229_v40  ;;  %v312_v9 = vmul.f32 %v310_v48, %v229_v40  ;;  %v431_v32 = vstv %s1152_s8  ;;  %v410_v11 = vstv %s1155_s9 }
 0x183   :  { %v231_v52 = vsel %vm75_vm1, %v213_v42, %v227_v43  ;;  %v432_v48 = vmul.f32 %v431_v32, %v1096_v47  ;;  %v411_v19 = vmul.f32 %v410_v11, %v1096_v47  ;;  %v436_v20 = vmul.f32 %v435_v15, %v1101_v50 }
 0x184   :  { %319 = vrot.lane.b32.xlu1 %v317_v17, %s966_s28  ;;  %375 = vrot.lane.b32.xlu0 %v373_v18, %s967_s29  ;;  %v339_v53 = vmul.f32 %v337_v14, %v231_v52  ;;  %v274_v54 = vmul.f32 %v272_v46, %v231_v52  ;;  %v295_v2 = vmul.f32 %v293_v33, %v231_v52  ;;  %v1203_v36 = vsub.s32 0, %v1047_v57 }
 0x185   :  { %v355_v46 = vmul.f32 %v354_v56, %v1096_v47  ;;  %v360_v6 = vmul.f32 %v358_v63, %v231_v52  ;;  %v393_v33 = vmul.f32 %v391_v28, %v231_v52  ;;  %v316_v14 = vmul.f32 %v314_v60, %v231_v52  ;;  %v650_v39 = vpop.permute.xlu0 %649 }
 0x186   :  { %v341_v58 = vadd.f32 %v339_v53, %v335_v44  ;;  %v276_v59 = vadd.f32 %v274_v54, %v270_v51  ;;  %v297_v8 = vadd.f32 %v295_v2, %v291_v45  ;;  %v438_v21 = vadd.f32 %v436_v20, %v432_v48 }
 0x187   :  { %v1175_v12 = vadd.f32 %v359_v5, %v355_v46  ;;  %v1177_v13 = vadd.f32 %v360_v6, %v356_v4  ;;  %v395_v17 = vadd.f32 %v393_v33, %v389_v7  ;;  %v318_v18 = vadd.f32 %v316_v14, %v312_v9 }
 0x188   :  { %342 = vrot.lane.b32.xlu1 %v340_v29, %s968_s6  ;;  %344 = vrot.lane.b32.xlu0 %v341_v58, %s968_s6  ;;  %v368_v60 = vmul.f32 %v366_v49, %v229_v40  ;;  %v372_v23 = vmul.f32 %v370_v62, %v231_v52  ;;  %v412_v47 = vmul.f32 %v410_v11, %v229_v40  ;;  %v470_v29 = vpop.permute.xlu1 %469  ;;  %v478_v37 = vsub.s32 4, %v1047_v57 }
 0x189   :  { %v416_v25 = vmul.f32 %v414_v16, %v231_v52  ;;  %v433_v27 = vmul.f32 %v431_v32, %v229_v40  ;;  %v437_v28 = vmul.f32 %v435_v15, %v231_v52  ;;  %v1209_v40 = vsub.s32 1, %v1047_v57  ;;  %v527_v45 = vpop.permute.xlu0 %526 }
 0x18a   :  { %v374_v24 = vadd.f32 %v372_v23, %v368_v60  ;;  %v475_v42 = vrot.slane %v1051_v61, %v1203_v36  ;;  %v479_v43 = vrot.slane %v1051_v61, %v478_v37  ;;  %v1216_v44 = vsub.s32 2, %v1047_v57 }
 0x18b   :  { %v418_v26 = vadd.f32 %v416_v25, %v412_v47  ;;  %v535_v51 = vsub.s32 6, %v1047_v57  ;;  %v506_v53 = vrot.slane %v1051_v61, %v1209_v40  ;;  %v630_v56 = vrot.slane %v1056_v3, %v1203_v36 }
 0x18c   :  { %396 = vrot.lane.b32.xlu1 %v394_v41, %s969_s4  ;;  %707 = vperm.xlu0 %847, %v1030_v10   ;;  %v415_v10 = vmul.f32 %v414_v16, %v1101_v50  ;;  %v439_v50 = vadd.f32 %v437_v28, %v433_v27  ;;  %v495_v30 = vpop.permute.xlu1 %494  ;;  %v509_v41 = vsub.s32 5, %v1047_v57  ;;  %v634_v58 = vrot.slane %v1056_v3, %v478_v37 }
 0x18d   :  { %v489_v63 = vrot.slane %v479_v43, %v1203_v36  ;;  %v532_v2 = vrot.slane %v1051_v61, %v1216_v44  ;;  %v536_v46 = vrot.slane %v1051_v61, %v535_v51  ;;  %v1233_v4 = vsub.s32 3, %v1047_v57 }
 0x18e   :  { %v417_v22 = vadd.f32 %v415_v10, %v411_v19  ;;  %v510_v54 = vrot.slane %v1051_v61, %v509_v41  ;;  %v516_v6 = vrot.slane %v506_v53, %v1209_v40  ;;  %v1239_v7 = vand.u32 127, %v109_v55 }
 0x18f   :  { %v561_v9 = vsub.s32 7, %v1047_v57  ;;  %v640_v32 = vrot.slane %v630_v56, %v1203_v36  ;;  %v644_v11 = vrot.slane %v634_v58, %v1203_v36  ;;  %v491_v16 = vmul.f32 %v489_v63, %v470_v29 }
 0x190   :  { %279 = vrot.lane.b32.xlu1 %v276_v59, %s965_s27  ;;  %398 = vrot.lane.b32.xlu0 %v395_v17, %s969_s4  ;;  %v501_v49 = vpop.permute.xlu1 %500  ;;  %v485_v59 = vrot.slane %v475_v42, %v1203_v36  ;;  %v542_v17 = vrot.slane %v532_v2, %v1216_v44  ;;  %v546_v48 = vrot.slane %v536_v46, %v1216_v44  ;;  %v1266_v42 = vadd.s32 128, %v1239_v7 }
 0x191   :  { %v521_v14 = vmul.f32 %v516_v6, %v501_v49  ;;  %v558_v55 = vrot.slane %v1051_v61, %v1233_v4  ;;  %v661_v10 = vrot.slane %v1056_v3, %v1209_v40  ;;  %v691_v60 = vrot.slane %v1056_v3, %v535_v51 }
 0x192   :  { %v490_v33 = vmul.f32 %v485_v59, %v470_v29  ;;  %v562_v23 = vrot.slane %v1051_v61, %v561_v9  ;;  %v646_v47 = vmul.f32 %v644_v11, %v625_v35  ;;  %v498_v25 = vadd.f32 %v495_v30, %v491_v16 }
 0x193   :  { %v547_v27 = vmul.f32 %v542_v17, %v527_v45  ;;  %v548_v28 = vmul.f32 %v546_v48, %v527_v45  ;;  %v239_v51 = vand.u32 15, %v1239_v7  ;;  %v701_v58 = vrot.slane %v691_v60, %v1216_v44 }
 0x194   :  { %300 = vrot.lane.b32.xlu1 %v297_v8, %s964_s1  ;;  %440 = vrot.lane.b32.xlu0 %v438_v21, %s970_s12  ;;  %v1196_v31 = vpop.permute.xlu1 %655  ;;  %v520_v8 = vrot.slane %v510_v54, %v1209_v40  ;;  %v497_v19 = vadd.f32 %v495_v30, %v490_v33  ;;  %v665_v21 = vrot.slane %v1056_v3, %v509_v41  ;;  %vm259_vm3 = vcmp.ge.s32.totalorder %v1239_v7, 16 }
 0x195   :  { %v653_v56 = vadd.f32 %v650_v39, %v646_v47  ;;  %vm281_vm4 = vcmp.lt.s32.totalorder %v1239_v7, 17  ;;  %vm302_vm5 = vcmp.lt.s32.totalorder %v1239_v7, 16  ;;  %v246_v6 = vand.u32 15, %v1266_v42 }
 0x196   :  { %v522_v20 = vmul.f32 %v520_v8, %v501_v49  ;;  %v671_v49 = vrot.slane %v661_v10, %v1209_v40  ;;  %v675_v37 = vrot.slane %v665_v21, %v1209_v40  ;;  %vm1281_vm6 = vcmp.ge.s32.totalorder %v239_v51, 1 }
 0x197   :  { %vm1285_vm7 = vcmp.lt.s32.totalorder %v239_v51, 15  ;;  %vm346_vm8 = vcmp.lt.s32.totalorder %v1239_v7, 1  ;;  %vm1294_vm9 = vmand %vm259_vm3, %vm1281_vm6  ;;  %vm323_vm10 = vcmp.lt.s32.totalorder %v1239_v7, 15  ;;  %vm1307_vm11 = vcmp.ge.s32.totalorder %v246_v6, 1 }
 0x198   :  { %321 = vrot.lane.b32.xlu1 %v318_v18, %s966_s28  ;;  %v1198_v34 = vpop.permute.xlu1 %681  ;;  %v524_v29 = vadd.f32 %v522_v20, %v498_v25  ;;  %v676_v63 = vmul.f32 %v671_v49, %v1196_v31  ;;  %v677_v2 = vmul.f32 %v675_v37, %v1196_v31  ;;  %v717_v20 = vrot.slane %v1056_v3, %v561_v9  ;;  %vm1324_vm13 = vmand %vm259_vm3, %vm1285_vm7 }
 0x199   :  { %vm1316_vm12 = vcmp.lt.s32.totalorder %v246_v6, 15  ;;  %vm379_vm14 = vcmp.lt.s32.totalorder %v1239_v7, 127  ;;  %vm264_vm15 = vcmp.lt.s32.totalorder %v1266_v42, 240  ;;  %vm400_vm1 = vcmp.lt.s32.totalorder %v1239_v7, 113 }
 0x19a   :  { %v550_v46 = vadd.f32 %v548_v28, %v524_v29  ;;  %vm423_vm2 = vcmp.lt.s32.totalorder %v1239_v7, 112 }
 0x19c   :  { %419 = vrot.lane.b32.xlu1 %v417_v22, %s971_s13  ;;  %v1200_v62 = vpop.permute.xlu1 %552  ;;  %v687_v22 = vrot.slane %v1056_v3, %v1216_v44 }
 0x19e   :  { %v697_v43 = vrot.slane %v687_v22, %v1216_v44 }
 0x1a0   :  { %377 = vrot.lane.b32.xlu1 %v374_v24, %s967_s29  ;;  %v645_v24 = vmul.f32 %v640_v32, %v625_v35  ;;  %v572_v35 = vrot.slane %v562_v23, %v1233_v4 }
 0x1a2   :  { %v652_v54 = vadd.f32 %v650_v39, %v645_v24  ;;  %v574_v45 = vmul.f32 %v572_v35, %v1200_v62  ;;  %v702_v39 = vmul.f32 %v697_v43, %v1198_v34 }
 0x1a4   :  { %421 = vrot.lane.b32.xlu1 %v418_v26, %s971_s13  ;;  %v523_v26 = vadd.f32 %v521_v14, %v497_v19  ;;  %v576_v17 = vadd.f32 %v574_v45, %v550_v46 }
 0x1a6   :  { %v549_v59 = vadd.f32 %v547_v27, %v523_v26  ;;  %v678_v26 = vadd.f32 %v676_v63, %v652_v54  ;;  %v703_v27 = vmul.f32 %v701_v58, %v1198_v34  ;;  %v727_v34 = vrot.slane %v717_v20, %v1233_v4 }
 0x1a8   :  { %442 = vrot.lane.b32.xlu1 %v439_v50, %s970_s12  ;;  %v568_v50 = vrot.slane %v558_v55, %v1233_v4  ;;  %v704_v51 = vadd.f32 %v702_v39, %v678_v26 }
 0x1aa   :  { %v573_v30 = vmul.f32 %v568_v50, %v1200_v62  ;;  %v679_v50 = vadd.f32 %v677_v2, %v653_v56 }
 0x1ac   :  { %v575_v8 = vadd.f32 %v573_v30, %v549_v59  ;;  %v705_v56 = vadd.f32 %v703_v27, %v679_v50 }
 0x1ae   :  { %v817_v29 = vmul.f32 -1.442695, %v575_v8 }
 0x1b0   :  { %858 = vpow2.f32 %v817_v29 }
 0x1bd   :  { %v859_v27 = vpop.eup %858 }
 0x1be   :  { %v583_v10 = vadd.f32 1.0, %v859_v27 }
 0x1f2   :  { %v1206_v38 = vpop.permute.xlu1 %298  ;;  %v278_v15 = vpop.permute.xlu0 %277 }
 0x1f6   :  { %v1219_v52 = vpop.permute.xlu1 %319  ;;  %v1263_v41 = vpop.permute.xlu0 %375 }
 0x1fa   :  { %v1235_v5 = vpop.permute.xlu1 %342  ;;  %v345_v11 = vpop.permute.xlu0 %344 }
 0x1fb   :  { %v347_v21 = vsel %vm346_vm8, %v1235_v5, %v345_v11  ;;  %v348_v57 = vsel %vm346_vm8, %v345_v11, %v1235_v5 }
 0x1fc   :  { %v349_v43 = vsel %vm1281_vm6, %v348_v57, 0.0  ;;  %v350_v35 = vsel %vm1307_vm11, %v347_v21, 0.0 }
 0x1fe   :  { %v1249_v18 = vpop.permute.xlu1 %396 }
 0x202   :  { %v280_v53 = vpop.permute.xlu1 %279 }
 0x203   :  { %v282_v33 = vsel %vm281_vm4, %v278_v15, %v280_v53  ;;  %v283_v14 = vsel %vm281_vm4, %v280_v53, %v278_v15  ;;  %v713_v15 = vrot.slane %v1056_v3, %v1233_v4  ;;  %v818_v53 = vmul.f32 -1.442695, %v576_v17 }
 0x204   :  { %v286_v9 = vsel %vm1294_vm9, %v283_v14, 0.0  ;;  %v287_v22 = vsel %vm1307_vm11, %v282_v33, 0.0  ;;  %vm444_vm4 = vcmp.lt.s32.totalorder %v1239_v7, 111 }
 0x205   :  { %860 = vpow2.f32 %v818_v53 }
 0x206   :  { %v301_v62 = vpop.permute.xlu1 %300 }
 0x207   :  { %v304_v16 = vsel %vm302_vm5, %v301_v62, %v1206_v38  ;;  %v303_v48 = vsel %vm302_vm5, %v1206_v38, %v301_v62  ;;  %v708_v54 = vpop.permute.xlu0 %707  ;;  %vm448_vm5 = vmand %vm264_vm15, %vm1316_vm12 }
 0x208   :  { %v305_v55 = vsel %vm259_vm3, %v304_v16, 0.0  ;;  %v308_v24 = vadd.f32 %v303_v48, %v287_v22  ;;  %v729_v63 = vmul.f32 %v727_v34, %v708_v54  ;;  %vm404_vm3 = vmand %vm264_vm15, %vm1307_vm11 }
 0x209   :  { %v307_v23 = vadd.f32 %v305_v55, %v286_v9 }
 0x20a   :  { %v322_v60 = vpop.permute.xlu1 %321  ;;  %v731_v6 = vadd.f32 %v729_v63, %v705_v56 }
 0x20b   :  { %v324_v47 = vsel %vm323_vm10, %v1219_v52, %v322_v60  ;;  %v325_v25 = vsel %vm323_vm10, %v322_v60, %v1219_v52  ;;  %v723_v52 = vrot.slane %v713_v15, %v1233_v4  ;;  %v399_v8 = vpop.permute.xlu0 %398 }
 0x20c   :  { %v328_v28 = vsel %vm1324_vm13, %v325_v25, 0.0  ;;  %v329_v5 = vsel %vm1316_vm12, %v324_v47, 0.0  ;;  %v820_v33 = vmul.f32 -1.442695, %v731_v6 }
 0x20d   :  { %v330_v49 = vadd.f32 %v328_v28, %v307_v23  ;;  %v331_v37 = vadd.f32 %v329_v5, %v308_v24  ;;  %v728_v45 = vmul.f32 %v723_v52, %v708_v54 }
 0x20e   :  { %v420_v30 = vpop.permute.xlu1 %419 }
 0x20f   :  { %v351_v58 = vadd.f32 %v349_v43, %v330_v49  ;;  %v352_v59 = vadd.f32 %v350_v35, %v331_v37  ;;  %v730_v4 = vadd.f32 %v728_v45, %v704_v51  ;;  %v441_v44 = vpop.permute.xlu0 %440 }
 0x211   :  { %v363_v2 = vadd.f32 %v1175_v12, %v351_v58  ;;  %v364_v46 = vadd.f32 %v1177_v13, %v352_v59  ;;  %v819_v31 = vmul.f32 -1.442695, %v730_v4  ;;  %v401_v12 = vsel %vm400_vm1, %v1249_v18, %v399_v8 }
 0x212   :  { %v378_v39 = vpop.permute.xlu1 %377  ;;  %v402_v13 = vsel %vm400_vm1, %v399_v8, %v1249_v18  ;;  %v405_v16 = vsel %vm1281_vm6, %v401_v12, 0.0  ;;  %v861_v5 = vpop.eup %860 }
 0x213   :  { %v380_v62 = vsel %vm379_vm14, %v1263_v41, %v378_v39  ;;  %v381_v11 = vsel %vm379_vm14, %v378_v39, %v1263_v41  ;;  %862 = vpow2.f32 %v819_v31  ;;  %v406_v19 = vsel %vm404_vm3, %v402_v13, 0.0 }
 0x214   :  { %v382_v41 = vsel %vm1285_vm7, %v380_v62, 0.0  ;;  %v383_v14 = vsel %vm1316_vm12, %v381_v11, 0.0  ;;  %864 = vpow2.f32 %v820_v33  ;;  %v584_v29 = vadd.f32 1.0, %v861_v5 }
 0x215   :  { %v384_v17 = vadd.f32 %v382_v41, %v363_v2  ;;  %v385_v48 = vadd.f32 %v383_v14, %v364_v46 }
 0x216   :  { %v422_v55 = vpop.permute.xlu1 %421 }
 0x217   :  { %v424_v15 = vsel %vm423_vm2, %v420_v30, %v422_v55  ;;  %v425_v18 = vsel %vm423_vm2, %v422_v55, %v420_v30  ;;  %v407_v20 = vadd.f32 %v405_v16, %v384_v17  ;;  %v408_v38 = vadd.f32 %v406_v19, %v385_v48 }
 0x218   :  { %v427_v21 = vsel %vm264_vm15, %v425_v18, 0.0 }
 0x219   :  { %v428_v57 = vadd.f32 %v424_v15, %v407_v20  ;;  %v429_v9 = vadd.f32 %v427_v21, %v408_v38 }
 0x21a   :  { %v443_v22 = vpop.permute.xlu1 %442 }
 0x21b   :  { %v445_v60 = vsel %vm444_vm4, %v441_v44, %v443_v22  ;;  %v446_v23 = vsel %vm444_vm4, %v443_v22, %v441_v44 }
 0x21c   :  { %v449_v24 = vsel %vm1285_vm7, %v445_v60, 0.0  ;;  %v450_v47 = vsel %vm448_vm5, %v446_v23, 0.0 }
 0x21d   :  { %v451_v25 = vadd.f32 %v449_v24, %v428_v57  ;;  %v452_v26 = vadd.f32 %v450_v47, %v429_v9 }
 0x21f   :  { %v815_v28 = vmul.f32 -1.442695, %v451_v25  ;;  %v816_v7 = vmul.f32 -1.442695, %v452_v26 }
 0x220   :  { %v863_v42 = vpop.eup %862 }
 0x221   :  { %866 = vpow2.f32 %v815_v28  ;;  %v865_v50 = vpop.eup %864  ;;  %v738_v49 = vadd.f32 1.0, %v863_v42 }
 0x222   :  { %868 = vpow2.f32 %v816_v7  ;;  %v739_v37 = vadd.f32 1.0, %v865_v50 }
 0x223   :  { %870 = vrcp.f32 %v583_v10 }
 0x224   :  { %872 = vrcp.f32 %v584_v29 }
 0x225   :  { %874 = vrcp.f32 %v738_v49 }
 0x226   :  { %876 = vrcp.f32 %v739_v37 }
 0x22e   :  { %v867_v32 = vpop.eup %866 }
 0x22f   :  { %v869_v43 = vpop.eup %868  ;;  %v459_v35 = vadd.f32 1.0, %v867_v32 }
 0x230   :  { %v460_v52 = vadd.f32 1.0, %v869_v43  ;;  %v871_v34 = vpop.eup %870 }
 0x231   :  { %878 = vrcp.f32 %v459_v35  ;;  %v873_v30 = vpop.eup %872 }
 0x232   :  { %880 = vrcp.f32 %v460_v52  ;;  %v875_v51 = vpop.eup %874  ;;  %v591_v54 = vcombine.low %v871_v34, %v873_v30 }
 0x233   :  { %v877_v53 = vpop.eup %876 }
 0x234   :  { %v746_v58 = vcombine.low %v875_v51, %v877_v53  ;;  %v593_v56 = vmul.f32 %v591_v54, %v1051_v61 }
 0x236   :  { %v748_v45 = vmul.f32 %v746_v58, %v1056_v3  ;;  %v594_v39 = vadd.f32 %v593_v56, %v1013_v0 }
 0x238   :  { %v749_v62 = vadd.f32 %v748_v45, %v1015_v1  ;;  %v610_v13 = vcombine.high %v594_v39, %v594_v39 }
 0x23a   :  { %v765_v14 = vcombine.high %v749_v62, %v749_v62 }
 0x23e   :  { %v879_v59 = vpop.eup %878 }
 0x23f   :  { %v881_v63 = vpop.eup %880  ;;  %v598_v2 = vrot.slane %v879_v59, %v1203_v36  ;;  %v753_v46 = vrot.slane %v879_v59, %v1209_v40 }
 0x240   :  { %v602_v4 = vrot.slane %v881_v63, %v1203_v36  ;;  %v757_v6 = vrot.slane %v881_v63, %v1209_v40 }
 0x242   :  { %v605_v8 = vcombine.low %v598_v2, %v602_v4  ;;  %v760_v11 = vcombine.low %v753_v46, %v757_v6 }
 0x244   :  { %v607_v31 = vmul.f32 %v605_v8, %v1051_v61  ;;  %v762_v33 = vmul.f32 %v760_v11, %v1056_v3 }
 0x246   :  { %v608_v12 = vadd.f32 %v607_v31, %v1013_v0  ;;  %v763_v41 = vadd.f32 %v762_v33, %v1015_v1 }
 0x248   :  { %v613_v36 = vcombine.low %v608_v12, %v608_v12  ;;  %v616_v40 = vsel %vm64_vm0, %v610_v13, %v608_v12  ;;  %v768_v16 = vcombine.low %v763_v41, %v763_v41  ;;  %v771_v17 = vsel %vm64_vm0, %v765_v14, %v763_v41 }
 0x249   :  { %618 = vst [vmem:[#allocation9 + $0x8] sm:$0xff] %v616_v40  ;;  %774 = vst [vmem:[#allocation9 + $0x18] sm:$0xff] %v771_v17 }
 0x24a   :  { %v615_v61 = vsel %vm64_vm0, %v594_v39, %v613_v36  ;;  %v770_v3 = vsel %vm64_vm0, %v749_v62, %v768_v16 }
 0x24b   :  { %617 = vst [vmem:[#allocation9] sm:$0xff] %v615_v61  ;;  %773 = vst [vmem:[#allocation9 + $0x10] sm:$0xff] %v770_v3 }
 0x24c   :  { %937 = shalt.err (!%p934_p5)
}
 0x24d   :  { %s973_s16 = smov 256  }
 0x24e   :  { %786 = dma.vmem_to_hbm [thread:$0]  %s781_s15, 512, %s1413_s5, [#allocation4], %s973_s16, %s973_s16, %s964_s1  }
 0x24f   :  { %952 = dma.done.wait [#allocation4], 512  }
 0x250   :  { %953 = vsyncadd [#allocation4], 4294966784 }
 0x251   :  { %790 = vsyncpa [#allocation3], 1 }
 0x252   :  { %791 = vsyncpa [#allocation4], 1 }
 0x253   :  { %792 = vsyncpa [#allocation5], 1 }
 0x254   :  { %793 = vsyncpa [#allocation7], 1 }

</bundles_post_ra>
